<compile_context>
chip_gen: v5e
topology: v5e:2x2
jax: 0.10.0
libtpu: 0.0.40
codegen_flags: <defaults>
</compile_context>

<pallas_src>
import jax
import jax.numpy as jnp
from jax.experimental import pallas as pl
from jax.experimental.pallas import tpu as pltpu


def _round_up(n, m):
    return ((n + m - 1) // m) * m


def _cdiv(a, b):
    return -(-a // b)


def _make_ffn_kernel(d_actual):
    """Kernel factory: closes over the true (unpadded) feature count for LN stats."""
    inv_d = 1.0 / float(d_actual)
    eps = 1e-5

    def ffn_kernel(x_ref, w1_ref, b1_ref, g1_ref, be1_ref,
                   w2_ref, b2_ref, g2_ref, be2_ref, o_ref):
        # ---- Linear 1: bf16 x bf16 -> f32 accumulate on the MXU ----
        h = jnp.dot(x_ref[...], w1_ref[...],
                    preferred_element_type=jnp.float32) + b1_ref[...]

        # ---- LayerNorm 1 + ReLU + bf16 cast (single fused elementwise pass) ----
        mu = jnp.sum(h, axis=-1, keepdims=True) * inv_d
        ex2 = jnp.sum(h * h, axis=-1, keepdims=True) * inv_d
        var = jnp.maximum(ex2 - mu * mu, 0.0)
        scale = jax.lax.rsqrt(var + eps) * g1_ref[...]           # fold gamma into scale
        h_act = jnp.maximum((h - mu) * scale + be1_ref[...], 0.0).astype(jnp.bfloat16)

        # ---- Linear 2 ----
        h2 = jnp.dot(h_act, w2_ref[...],
                     preferred_element_type=jnp.float32) + b2_ref[...]

        # ---- LayerNorm 2 -> bf16 output ----
        mu2 = jnp.sum(h2, axis=-1, keepdims=True) * inv_d
        ex22 = jnp.sum(h2 * h2, axis=-1, keepdims=True) * inv_d
        var2 = jnp.maximum(ex22 - mu2 * mu2, 0.0)
        scale2 = jax.lax.rsqrt(var2 + eps) * g2_ref[...]
        o_ref[...] = ((h2 - mu2) * scale2 + be2_ref[...]).astype(o_ref.dtype)

    return ffn_kernel


def ffn_pallas(x_p, w1, b1, g1, be1, w2, b2, g2, be2, *, d_actual, tm,
               out_dtype=jnp.bfloat16):
    """x_p: [Np, Dp] bf16 (rows padded to a multiple of tm, features padded to 128).
    w1/w2: [Dp, Dp] bf16 pre-transposed to (in, out). Biases/LN params: [1, Dp] f32."""
    Np, Dp = x_p.shape
    assert Np % tm == 0 and Dp % 128 == 0

    out_bytes = jnp.dtype(out_dtype).itemsize

    row_spec = pl.BlockSpec((tm, Dp), lambda i: (i, 0))
    # Constant index_map -> fetched once; single-buffer to save VMEM for bigger row tiles.
    mat_spec = pl.BlockSpec((Dp, Dp), lambda i: (0, 0), pipeline_mode=pl.Buffered(1))
    vec_spec = pl.BlockSpec((1, Dp), lambda i: (0, 0), pipeline_mode=pl.Buffered(1))

    flops = 4 * Np * Dp * Dp                               # two [Np,Dp]x[Dp,Dp] matmuls
    bytes_accessed = (Np * Dp * 2                          # x in (bf16)
                      + Np * Dp * out_bytes                # out
                      + 2 * Dp * Dp * 2                    # weights (bf16)
                      + 6 * Dp * 4)                        # biases / LN params (f32)
    cost = pl.CostEstimate(flops=flops, transcendentals=2 * Np,
                           bytes_accessed=bytes_accessed)

    # VMEM budget: single-buffered weights + double-buffered activations + headroom.
    vmem_need = (2 * Dp * Dp * 2                           # weights, 1 buffer each
                 + 2 * tm * Dp * 2                         # x, 2 buffers
                 + 2 * tm * Dp * out_bytes                 # out, 2 buffers
                 + 12 * Dp * 4                             # small param vectors
                 + 6 * tm * Dp * 4)                        # f32 intermediates headroom
    try:
        phys_vmem = int(pltpu.get_tpu_info().vmem_capacity_bytes)
    except Exception:                                      # pragma: no cover - fallback
        phys_vmem = 64 * 1024 * 1024
    vmem_cap = (3 * phys_vmem) // 4                        # leave compiler headroom
    vmem_limit = int(min(max(2 * vmem_need, 16 * 1024 * 1024), vmem_cap))

    return pl.pallas_call(
        _make_ffn_kernel(d_actual),
        out_shape=jax.ShapeDtypeStruct((Np, Dp), out_dtype),
        grid_spec=pltpu.PrefetchScalarGridSpec(
            num_scalar_prefetch=0,
            grid=(Np // tm,),
            in_specs=[row_spec,
                      mat_spec, vec_spec, vec_spec, vec_spec,
                      mat_spec, vec_spec, vec_spec, vec_spec],
            out_specs=row_spec,
        ),
        compiler_params=pltpu.CompilerParams(
            dimension_semantics=("parallel",),
            vmem_limit_bytes=vmem_limit),
        cost_estimate=cost,
    )(x_p, w1, b1, g1, be1, w2, b2, g2, be2)


def _choose_row_tiling(N, tm):
    """Balanced row tiling: >= 2 grid steps (v7x megacore) when N >= 32, and
    per-tile row-padding waste < 16 rows (bf16 sublane packing multiple)."""
    n_tiles = max(_cdiv(N, tm), 1)
    if N >= 32:
        n_tiles = max(n_tiles, 2)
    tm_eff = _round_up(_cdiv(N, n_tiles), 16)
    Np = n_tiles * tm_eff
    return tm_eff, Np


def ffn_forward(x_bsd, params, *, tm=256, out_dtype=jnp.bfloat16):
    """x_bsd: [B, S, D] float32. params: unpadded f32 (w1_t, b1, g1, be1, w2_t, b2, g2, be2).
    Returns [B, S, D] in `out_dtype` (bf16 by default to halve the output HBM traffic)."""
    w1, b1, g1, be1, w2, b2, g2, be2 = params
    B, S, D = x_bsd.shape
    N = B * S
    Dp = _round_up(D, 128)                       # lane-dense feature dim
    tm_eff, Np = _choose_row_tiling(N, tm)

    x2 = x_bsd.reshape(N, D).astype(jnp.bfloat16)
    x_p = jnp.pad(x2, ((0, Np - N), (0, Dp - D)))

    def pad_mat(w):                              # [D,D] f32 -> [Dp,Dp] bf16, zero-padded
        return jnp.pad(w.astype(jnp.bfloat16), ((0, Dp - D), (0, Dp - D)))

    def pad_vec(v):                              # [*,D] f32 -> [1,Dp] f32, zero-padded
        return jnp.pad(v.reshape(1, D).astype(jnp.float32), ((0, 0), (0, Dp - D)))

    out = ffn_pallas(x_p,
                     pad_mat(w1), pad_vec(b1), pad_vec(g1), pad_vec(be1),
                     pad_mat(w2), pad_vec(b2), pad_vec(g2), pad_vec(be2),
                     d_actual=D, tm=tm_eff, out_dtype=out_dtype)
    return out[:N, :D].reshape(B, S, D)


def init_params(key, state_size):
    """Deterministic synthetic parameter init (PyTorch nn.Linear-like uniform)."""
    ks = jax.random.split(key, 4)
    bound = float(state_size) ** -0.5
    # nn.Linear weight is [out, in]; store transposed [in, out] for x @ W_t.
    w1_t = jax.random.uniform(ks[0], (state_size, state_size), jnp.float32, -bound, bound)
    b1 = jax.random.uniform(ks[1], (1, state_size), jnp.float32, -bound, bound)
    w2_t = jax.random.uniform(ks[2], (state_size, state_size), jnp.float32, -bound, bound)
    b2 = jax.random.uniform(ks[3], (1, state_size), jnp.float32, -bound, bound)
    # nn.LayerNorm default: weight = 1, bias = 0.
    g1 = jnp.ones((1, state_size), jnp.float32)
    be1 = jnp.zeros((1, state_size), jnp.float32)
    g2 = jnp.ones((1, state_size), jnp.float32)
    be2 = jnp.zeros((1, state_size), jnp.float32)
    return (w1_t, b1, g1, be1, w2_t, b2, g2, be2)


def ffn_reference(x_bsd, params):
    """Pure-JAX reference matching PyTorch semantics, with the same bf16-input /
    f32-accumulate matmul precision the kernel uses (LN/ReLU in f32)."""
    w1, b1, g1, be1, w2, b2, g2, be2 = params
    eps = 1e-5
    bf = lambda a: a.astype(jnp.bfloat16)

    def ln(h, g, b):
        mu = jnp.mean(h, axis=-1, keepdims=True)
        var = jnp.mean((h - mu) ** 2, axis=-1, keepdims=True)
        return (h - mu) * jax.lax.rsqrt(var + eps) * g.reshape(-1) + b.reshape(-1)

    h = jnp.dot(bf(x_bsd), bf(w1), preferred_element_type=jnp.float32) + b1.reshape(-1)
    h = jnp.maximum(ln(h, g1, be1), 0.0)
    h2 = jnp.dot(bf(h), bf(w2), preferred_element_type=jnp.float32) + b2.reshape(-1)
    return ln(h2, g2, be2)


if __name__ == "__main__":
    state_size = 200   # module default; exercises the 200 -> 256 lane-padding path
    B, S = 2, 8        # 16 rows total

    key = jax.random.PRNGKey(0)
    kx, kp = jax.random.split(key)
    x = jax.random.normal(kx, (B, S, state_size), jnp.float32)
    params = init_params(kp, state_size)

    out = ffn_forward(x, params)
    out = jax.block_until_ready(out)

    ref = ffn_reference(x, params)
    out_f32 = out.astype(jnp.float32)
    assert out.shape == (B, S, state_size)
    assert out.dtype == jnp.bfloat16
    assert bool(jnp.all(jnp.isfinite(out_f32)))
    max_err = float(jnp.max(jnp.abs(out_f32 - ref)))
    assert jnp.allclose(out_f32, ref, atol=3e-2, rtol=3e-2), f"max abs err {max_err}"

    print("KERNEL_OK")
</pallas_src>

<mosaic_0001>
module attributes {stable_mosaic.version = 11 : i64} {
  func.func @ffn_kernel(%arg0: i32, %arg1: memref<16x256xbf16, #tpu.memory_space<vmem>>, %arg2: memref<256x256xbf16, #tpu.memory_space<vmem>>, %arg3: memref<1x256xf32, #tpu.memory_space<vmem>>, %arg4: memref<1x256xf32, #tpu.memory_space<vmem>>, %arg5: memref<1x256xf32, #tpu.memory_space<vmem>>, %arg6: memref<256x256xbf16, #tpu.memory_space<vmem>>, %arg7: memref<1x256xf32, #tpu.memory_space<vmem>>, %arg8: memref<1x256xf32, #tpu.memory_space<vmem>>, %arg9: memref<1x256xf32, #tpu.memory_space<vmem>>, %arg10: memref<16x256xbf16, #tpu.memory_space<vmem>>) attributes {dimension_semantics = [#tpu.dimension_semantics<parallel>], iteration_bounds = array<i64: 1>, scalar_prefetch = 0 : i64, scratch_operands = 0 : i64, tpu.core_type = #tpu.core_type<tc>, window_params = [{transform_indices = @transform_0, window_bounds = array<i64: 16, 256>}, {pipeline_mode = #tpu.pipeline_mode<synchronous>, transform_indices = @transform_1, window_bounds = array<i64: 256, 256>}, {pipeline_mode = #tpu.pipeline_mode<synchronous>, transform_indices = @transform_2, window_bounds = array<i64: 1, 256>}, {pipeline_mode = #tpu.pipeline_mode<synchronous>, transform_indices = @transform_3, window_bounds = array<i64: 1, 256>}, {pipeline_mode = #tpu.pipeline_mode<synchronous>, transform_indices = @transform_4, window_bounds = array<i64: 1, 256>}, {pipeline_mode = #tpu.pipeline_mode<synchronous>, transform_indices = @transform_5, window_bounds = array<i64: 256, 256>}, {pipeline_mode = #tpu.pipeline_mode<synchronous>, transform_indices = @transform_6, window_bounds = array<i64: 1, 256>}, {pipeline_mode = #tpu.pipeline_mode<synchronous>, transform_indices = @transform_7, window_bounds = array<i64: 1, 256>}, {pipeline_mode = #tpu.pipeline_mode<synchronous>, transform_indices = @transform_8, window_bounds = array<i64: 1, 256>}, {transform_indices = @transform_9, window_bounds = array<i64: 16, 256>}]} {
    %c0 = arith.constant 0 : index
    %c0_0 = arith.constant 0 : index
    %0 = vector.load %arg1[%c0, %c0_0] : memref<16x256xbf16, #tpu.memory_space<vmem>>, vector<16x256xbf16>
    %c0_1 = arith.constant 0 : index
    %c0_2 = arith.constant 0 : index
    %1 = vector.load %arg2[%c0_1, %c0_2] : memref<256x256xbf16, #tpu.memory_space<vmem>>, vector<256x256xbf16>
    %cst = arith.constant dense<0.000000e+00> : vector<16x256xf32>
    %2 = tpu.matmul %0, %1, %cst {dimension_numbers = #tpu.dot_dimension_numbers<[1], [0], [0], [1], [0, 0, 1, 1], [], []>} : vector<16x256xbf16>, vector<256x256xbf16>, vector<16x256xf32> -> vector<16x256xf32>
    %c0_3 = arith.constant 0 : index
    %c0_4 = arith.constant 0 : index
    %3 = vector.load %arg3[%c0_3, %c0_4] : memref<1x256xf32, #tpu.memory_space<vmem>>, vector<1x256xf32>
    %4 = vector.broadcast %3 : vector<1x256xf32> to vector<16x256xf32>
    %5 = arith.addf %2, %4 : vector<16x256xf32>
    %cst_5 = arith.constant dense<0.000000e+00> : vector<16xf32>
    %6 = vector.multi_reduction <add>, %5, %cst_5 [1] : vector<16x256xf32> to vector<16xf32>
    %7 = vector.shape_cast %6 : vector<16xf32> to vector<16x1xf32>
    %cst_6 = arith.constant 5.000000e-03 : f32
    %8 = vector.broadcast %cst_6 : f32 to vector<16x1xf32>
    %9 = arith.mulf %7, %8 : vector<16x1xf32>
    %10 = arith.mulf %5, %5 : vector<16x256xf32>
    %cst_7 = arith.constant dense<0.000000e+00> : vector<16xf32>
    %11 = vector.multi_reduction <add>, %10, %cst_7 [1] : vector<16x256xf32> to vector<16xf32>
    %12 = vector.shape_cast %11 : vector<16xf32> to vector<16x1xf32>
    %cst_8 = arith.constant 5.000000e-03 : f32
    %13 = vector.broadcast %cst_8 : f32 to vector<16x1xf32>
    %14 = arith.mulf %12, %13 : vector<16x1xf32>
    %15 = arith.mulf %9, %9 : vector<16x1xf32>
    %16 = arith.subf %14, %15 : vector<16x1xf32>
    %cst_9 = arith.constant 0.000000e+00 : f32
    %17 = vector.broadcast %cst_9 : f32 to vector<16x1xf32>
    %18 = arith.maximumf %16, %17 : vector<16x1xf32>
    %cst_10 = arith.constant 9.99999974E-6 : f32
    %19 = vector.broadcast %cst_10 : f32 to vector<16x1xf32>
    %20 = arith.addf %18, %19 : vector<16x1xf32>
    %21 = math.rsqrt %20 : vector<16x1xf32>
    %c0_11 = arith.constant 0 : index
    %c0_12 = arith.constant 0 : index
    %22 = vector.load %arg4[%c0_11, %c0_12] : memref<1x256xf32, #tpu.memory_space<vmem>>, vector<1x256xf32>
    %23 = vector.broadcast %21 : vector<16x1xf32> to vector<16x256xf32>
    %24 = vector.broadcast %22 : vector<1x256xf32> to vector<16x256xf32>
    %25 = arith.mulf %23, %24 : vector<16x256xf32>
    %26 = vector.broadcast %9 : vector<16x1xf32> to vector<16x256xf32>
    %27 = arith.subf %5, %26 : vector<16x256xf32>
    %28 = arith.mulf %27, %25 : vector<16x256xf32>
    %c0_13 = arith.constant 0 : index
    %c0_14 = arith.constant 0 : index
    %29 = vector.load %arg5[%c0_13, %c0_14] : memref<1x256xf32, #tpu.memory_space<vmem>>, vector<1x256xf32>
    %30 = vector.broadcast %29 : vector<1x256xf32> to vector<16x256xf32>
    %31 = arith.addf %28, %30 : vector<16x256xf32>
    %cst_15 = arith.constant 0.000000e+00 : f32
    %32 = vector.broadcast %cst_15 : f32 to vector<16x256xf32>
    %33 = arith.maximumf %31, %32 : vector<16x256xf32>
    %34 = arith.truncf %33 : vector<16x256xf32> to vector<16x256xbf16>
    %c0_16 = arith.constant 0 : index
    %c0_17 = arith.constant 0 : index
    %35 = vector.load %arg6[%c0_16, %c0_17] : memref<256x256xbf16, #tpu.memory_space<vmem>>, vector<256x256xbf16>
    %cst_18 = arith.constant dense<0.000000e+00> : vector<16x256xf32>
    %36 = tpu.matmul %34, %35, %cst_18 {dimension_numbers = #tpu.dot_dimension_numbers<[1], [0], [0], [1], [0, 0, 1, 1], [], []>} : vector<16x256xbf16>, vector<256x256xbf16>, vector<16x256xf32> -> vector<16x256xf32>
    %c0_19 = arith.constant 0 : index
    %c0_20 = arith.constant 0 : index
    %37 = vector.load %arg7[%c0_19, %c0_20] : memref<1x256xf32, #tpu.memory_space<vmem>>, vector<1x256xf32>
    %38 = vector.broadcast %37 : vector<1x256xf32> to vector<16x256xf32>
    %39 = arith.addf %36, %38 : vector<16x256xf32>
    %cst_21 = arith.constant dense<0.000000e+00> : vector<16xf32>
    %40 = vector.multi_reduction <add>, %39, %cst_21 [1] : vector<16x256xf32> to vector<16xf32>
    %41 = vector.shape_cast %40 : vector<16xf32> to vector<16x1xf32>
    %cst_22 = arith.constant 5.000000e-03 : f32
    %42 = vector.broadcast %cst_22 : f32 to vector<16x1xf32>
    %43 = arith.mulf %41, %42 : vector<16x1xf32>
    %44 = arith.mulf %39, %39 : vector<16x256xf32>
    %cst_23 = arith.constant dense<0.000000e+00> : vector<16xf32>
    %45 = vector.multi_reduction <add>, %44, %cst_23 [1] : vector<16x256xf32> to vector<16xf32>
    %46 = vector.shape_cast %45 : vector<16xf32> to vector<16x1xf32>
    %cst_24 = arith.constant 5.000000e-03 : f32
    %47 = vector.broadcast %cst_24 : f32 to vector<16x1xf32>
    %48 = arith.mulf %46, %47 : vector<16x1xf32>
    %49 = arith.mulf %43, %43 : vector<16x1xf32>
    %50 = arith.subf %48, %49 : vector<16x1xf32>
    %cst_25 = arith.constant 0.000000e+00 : f32
    %51 = vector.broadcast %cst_25 : f32 to vector<16x1xf32>
    %52 = arith.maximumf %50, %51 : vector<16x1xf32>
    %cst_26 = arith.constant 9.99999974E-6 : f32
    %53 = vector.broadcast %cst_26 : f32 to vector<16x1xf32>
    %54 = arith.addf %52, %53 : vector<16x1xf32>
    %55 = math.rsqrt %54 : vector<16x1xf32>
    %c0_27 = arith.constant 0 : index
    %c0_28 = arith.constant 0 : index
    %56 = vector.load %arg8[%c0_27, %c0_28] : memref<1x256xf32, #tpu.memory_space<vmem>>, vector<1x256xf32>
    %57 = vector.broadcast %55 : vector<16x1xf32> to vector<16x256xf32>
    %58 = vector.broadcast %56 : vector<1x256xf32> to vector<16x256xf32>
    %59 = arith.mulf %57, %58 : vector<16x256xf32>
    %60 = vector.broadcast %43 : vector<16x1xf32> to vector<16x256xf32>
    %61 = arith.subf %39, %60 : vector<16x256xf32>
    %62 = arith.mulf %61, %59 : vector<16x256xf32>
    %c0_29 = arith.constant 0 : index
    %c0_30 = arith.constant 0 : index
    %63 = vector.load %arg9[%c0_29, %c0_30] : memref<1x256xf32, #tpu.memory_space<vmem>>, vector<1x256xf32>
    %64 = vector.broadcast %63 : vector<1x256xf32> to vector<16x256xf32>
    %65 = arith.addf %62, %64 : vector<16x256xf32>
    %66 = arith.truncf %65 : vector<16x256xf32> to vector<16x256xbf16>
    %c0_31 = arith.constant 0 : index
    %c0_32 = arith.constant 0 : index
    %67 = vector.load %arg10[%c0_31, %c0_32] : memref<16x256xbf16, #tpu.memory_space<vmem>>, vector<16x256xbf16>
    tpu.vector_store %arg10[%c0_31, %c0_32], %66 {strides = array<i32>} : memref<16x256xbf16, #tpu.memory_space<vmem>>, vector<16x256xbf16>,
    return
  }
  func.func @transform_0(%arg0: i32) -> (i32, i32) {
    %c0_i32 = arith.constant 0 : i32
    %c0_i32_0 = arith.constant 0 : i32
    return %arg0, %c0_i32 : i32, i32
  }
  func.func @transform_1(%arg0: i32) -> (i32, i32) {
    %c0_i32 = arith.constant 0 : i32
    %c0_i32_0 = arith.constant 0 : i32
    %c0_i32_1 = arith.constant 0 : i32
    return %c0_i32, %c0_i32_0 : i32, i32
  }
  func.func @transform_2(%arg0: i32) -> (i32, i32) {
    %c0_i32 = arith.constant 0 : i32
    %c0_i32_0 = arith.constant 0 : i32
    %c0_i32_1 = arith.constant 0 : i32
    return %c0_i32, %c0_i32_0 : i32, i32
  }
  func.func @transform_3(%arg0: i32) -> (i32, i32) {
    %c0_i32 = arith.constant 0 : i32
    %c0_i32_0 = arith.constant 0 : i32
    %c0_i32_1 = arith.constant 0 : i32
    return %c0_i32, %c0_i32_0 : i32, i32
  }
  func.func @transform_4(%arg0: i32) -> (i32, i32) {
    %c0_i32 = arith.constant 0 : i32
    %c0_i32_0 = arith.constant 0 : i32
    %c0_i32_1 = arith.constant 0 : i32
    return %c0_i32, %c0_i32_0 : i32, i32
  }
  func.func @transform_5(%arg0: i32) -> (i32, i32) {
    %c0_i32 = arith.constant 0 : i32
    %c0_i32_0 = arith.constant 0 : i32
    %c0_i32_1 = arith.constant 0 : i32
    return %c0_i32, %c0_i32_0 : i32, i32
  }
  func.func @transform_6(%arg0: i32) -> (i32, i32) {
    %c0_i32 = arith.constant 0 : i32
    %c0_i32_0 = arith.constant 0 : i32
    %c0_i32_1 = arith.constant 0 : i32
    return %c0_i32, %c0_i32_0 : i32, i32
  }
  func.func @transform_7(%arg0: i32) -> (i32, i32) {
    %c0_i32 = arith.constant 0 : i32
    %c0_i32_0 = arith.constant 0 : i32
    %c0_i32_1 = arith.constant 0 : i32
    return %c0_i32, %c0_i32_0 : i32, i32
  }
  func.func @transform_8(%arg0: i32) -> (i32, i32) {
    %c0_i32 = arith.constant 0 : i32
    %c0_i32_0 = arith.constant 0 : i32
    %c0_i32_1 = arith.constant 0 : i32
    return %c0_i32, %c0_i32_0 : i32, i32
  }
  func.func @transform_9(%arg0: i32) -> (i32, i32) {
    %c0_i32 = arith.constant 0 : i32
    %c0_i32_0 = arith.constant 0 : i32
    return %arg0, %c0_i32 : i32, i32
  }
}

</mosaic_0001>

<bundles_post_ra>
// kernel: tpu_custom_call.1
= control target key start
LH: loop header
LB: loop body
LE: loop exit
PB: predicated region body
PF: predicated region fallthrough
CT: control target
= control target key end

     0   :  { %14 = vsyncpa [#allocation3], 0  ;;  %s1511_s0 = inlined_call_operand.hbm [shape: bf16[16,256], index: 0, kind: input, shape index: {}]   ;;  %s1512_s1 = inlined_call_operand.hbm [shape: bf16[256,256], index: 1, kind: input, shape index: {}]   ;;  %s1513_s2 = inlined_call_operand.hbm [shape: f32[1,256], index: 2, kind: input, shape index: {}]   ;;  %s1514_s3 = inlined_call_operand.vmem [shape: f32[1,256], index: 3, kind: input, shape index: {}]   ;;  %s1515_s4 = inlined_call_operand.hbm [shape: f32[1,256], index: 4, kind: input, shape index: {}]   ;;  %s1516_s5 = inlined_call_operand.hbm [shape: bf16[256,256], index: 5, kind: input, shape index: {}]   ;;  %s1517_s6 = inlined_call_operand.vmem [shape: f32[1,256], index: 6, kind: input, shape index: {}]   ;;  %s1518_s7 = inlined_call_operand.vmem [shape: f32[1,256], index: 7, kind: input, shape index: {}]   ;;  %s1519_s8 = inlined_call_operand.hbm [shape: f32[1,256], index: 8, kind: input, shape index: {}]   ;;  %s1520_s9 = inlined_call_operand.hbm [shape: bf16[16,256], index: 9, kind: output, shape index: {}]  }
   0x1   :  { %15 = vsyncpa [#allocation6], 0 }
   0x2   :  { %16 = vsyncpa [#allocation9], 0 }
   0x3   :  { %17 = vsyncpa [#allocation12], 0 }
   0x4   :  { %18 = vsyncpa [#allocation4], 0  ;;  %s36_s11 = sshll.u32 %s1512_s1, 4  ;;  %s1350_s12 = smov [#allocation5]   ;;  %s37_s11 = int_to_ptr.hbm [resolvable:$true] %s36_s11 }
   0x5   :  { %s38_s13 = sshll.u32 %s1350_s12, 4  ;;  %s63_s16 = sshll.u32 %s1515_s4, 4  ;;  %s39_s13 = int_to_ptr.vmem [resolvable:$true] %s38_s13  ;;  %s64_s16 = int_to_ptr.hbm [resolvable:$true] %s63_s16 }
   0x6   :  { %s1351_s17 = smov 128   ;;  %s1352_s18 = smov 8  }
   0x7   :  { %44 = dma.hbm_to_vmem [thread:$0]  %s37_s11, 4096, %s39_s13, [#allocation6], %s1351_s17, %s1351_s17, %s1352_s18  }
   0x8   :  { %s1353_s19 = smov [#allocation8]   ;;  %s23_s1 = sshll.u32 %s1511_s0, 4  ;;  %s24_s1 = int_to_ptr.hbm [resolvable:$true] %s23_s1 }
   0x9   :  { %s65_s20 = sshll.u32 %s1353_s19, 4  ;;  %s50_s4 = sshll.u32 %s1513_s2, 4  ;;  %s66_s20 = int_to_ptr.vmem [resolvable:$true] %s65_s20  ;;  %s51_s4 = int_to_ptr.hbm [resolvable:$true] %s50_s4 }
   0xa   :  { %68 = dma.hbm_to_vmem [thread:$0]  %s64_s16, 32, %s66_s20, [#allocation9]  }
   0xb   :  { %s1354_s25 = smov [#allocation2]   ;;  %s1355_s27 = smov [#allocation7]  }
   0xc   :  { %s25_s26 = sshll.u32 %s1354_s25, 4  ;;  %s52_s28 = sshll.u32 %s1355_s27, 4  ;;  %s26_s26 = int_to_ptr.vmem [resolvable:$true] %s25_s26  ;;  %s53_s28 = int_to_ptr.vmem [resolvable:$true] %s52_s28 }
   0xd   :  { %31 = dma.hbm_to_vmem [thread:$0]  %s24_s1, 256, %s26_s26, [#allocation3], %s1351_s17, %s1351_s17, %s1352_s18  }
   0xe   :  { %s73_s0 = sshll.u32 %s1516_s5, 4  ;;  %s91_s2 = sshll.u32 %s1519_s8, 4  ;;  %s74_s0 = int_to_ptr.hbm [resolvable:$true] %s73_s0  ;;  %s92_s2 = int_to_ptr.hbm [resolvable:$true] %s91_s2 }
   0xf   :  { %55 = dma.hbm_to_vmem [thread:$0]  %s51_s4, 32, %s53_s28, [#allocation6]  }
  0x10   :  { %s1356_s12 = smov [#allocation10]   ;;  %s1357_s14 = smov [#allocation11]  }
  0x11   :  { %s75_s13 = sshll.u32 %s1356_s12, 4  ;;  %s93_s15 = sshll.u32 %s1357_s14, 4  ;;  %s76_s13 = int_to_ptr.vmem [resolvable:$true] %s75_s13  ;;  %s94_s15 = int_to_ptr.vmem [resolvable:$true] %s93_s15 }
  0x12   :  { %81 = dma.hbm_to_vmem [thread:$0]  %s74_s0, 4096, %s76_s13, [#allocation9], %s1351_s17, %s1351_s17, %s1352_s18  }
  0x13   :  { %96 = dma.hbm_to_vmem [thread:$0]  %s92_s2, 32, %s94_s15, [#allocation12]  }
  0x14   :  { %1340 = dma.done.wait [#allocation3], 256  }
  0x15   :  { %1341 = vsyncadd [#allocation3], 4294967040 }
  0x16   :  { %1342 = dma.done.wait [#allocation6], 4128  }
  0x17   :  { %1343 = vsyncadd [#allocation6], 4294963168 }
  0x18   :  { %1344 = dma.done.wait [#allocation9], 4128  }
  0x19   :  { %1345 = vsyncadd [#allocation9], 4294963168 }
  0x1a   :  { %1346 = dma.done.wait [#allocation12], 32  }
  0x1b   :  { %1347 = vsyncadd [#allocation12], 4294967264  ;;  %v891_v0 = vld [vmem:[#allocation5 + $0x70] sm:$0xf]  ;;  %v1106_v1 = vld [vmem:[#allocation5 + $0x74] sm:$0xf0] }
  0x1c   :  { %v955_v2 = vld [vmem:[#allocation5 + $0xf0] sm:$0xf]  ;;  %v892_v3 = vor.u32 %v1106_v1, %v891_v0  ;;  %v1122_v4 = vld [vmem:[#allocation5 + $0xf4] sm:$0xf0]  ;;  %v1105_v5 = vld [vmem:[#allocation5 + $0x74] sm:$0xf] }
  0x1d   :  { %v893_v6 = vld [vmem:[#allocation5 + $0x78] sm:$0xf0]  ;;  %v956_v7 = vor.u32 %v1122_v4, %v955_v2  ;;  %v1121_v9 = vld [vmem:[#allocation5 + $0xf4] sm:$0xf]  ;;  %v883_v11 = vld [vmem:[#allocation5 + $0x60] sm:$0xf] }
  0x1e   :  { %v896_v8 = vor.u32 %v1105_v5, %v893_v6  ;;  %v957_v10 = vld [vmem:[#allocation5 + $0xf8] sm:$0xf0]  ;;  %331 = vmatpush.bf16.msra.mxu0 %v892_v3  ;;  %v1104_v13 = vld [vmem:[#allocation5 + $0x64] sm:$0xf0]  ;;  %v947_v14 = vld [vmem:[#allocation5 + $0xe0] sm:$0xf] }
  0x1f   :  { %v960_v12 = vor.u32 %v1121_v9, %v957_v10  ;;  %v1120_v15 = vld [vmem:[#allocation5 + $0xe4] sm:$0xf0]  ;;  %345 = vmatpush.bf16.msra.mxu1 %v956_v7  ;;  %v884_v16 = vor.u32 %v1104_v13, %v883_v11  ;;  %v1103_v18 = vld [vmem:[#allocation5 + $0x64] sm:$0xf]  ;;  %v885_v19 = vld [vmem:[#allocation5 + $0x68] sm:$0xf0] }
  0x20   :  { %359 = vmatpush.bf16.msra.mxu2 %v896_v8  ;;  %v948_v17 = vor.u32 %v1120_v15, %v947_v14  ;;  %v1119_v20 = vld [vmem:[#allocation5 + $0xe4] sm:$0xf]  ;;  %v888_v21 = vor.u32 %v1103_v18, %v885_v19  ;;  %v949_v22 = vld [vmem:[#allocation5 + $0xe8] sm:$0xf0]  ;;  %v875_v23 = vld [vmem:[#allocation5 + $0x50] sm:$0xf] }
  0x21   :  { %373 = vmatpush.bf16.msra.mxu3 %v960_v12  ;;  %v1102_v24 = vld [vmem:[#allocation5 + $0x54] sm:$0xf0]  ;;  %v952_v25 = vor.u32 %v1119_v20, %v949_v22  ;;  %v939_v26 = vld [vmem:[#allocation5 + $0xd0] sm:$0xf]  ;;  %v1101_v28 = vld [vmem:[#allocation5 + $0x54] sm:$0xf] }
  0x22   :  { %v1118_v27 = vld [vmem:[#allocation5 + $0xd4] sm:$0xf0]  ;;  %332 = vmatpush.bf16.msra.mxu0 %v884_v16  ;;  %v876_v29 = vor.u32 %v1102_v24, %v875_v23  ;;  %v877_v30 = vld [vmem:[#allocation5 + $0x58] sm:$0xf0]  ;;  %v1117_v31 = vld [vmem:[#allocation5 + $0xd4] sm:$0xf] }
  0x23   :  { %v941_v32 = vld [vmem:[#allocation5 + $0xd8] sm:$0xf0]  ;;  %346 = vmatpush.bf16.msra.mxu1 %v948_v17  ;;  %v940_v33 = vor.u32 %v1118_v27, %v939_v26  ;;  %v880_v34 = vor.u32 %v1101_v28, %v877_v30  ;;  %v867_v35 = vld [vmem:[#allocation5 + $0x40] sm:$0xf]  ;;  %v1100_v36 = vld [vmem:[#allocation5 + $0x44] sm:$0xf0] }
  0x24   :  { %360 = vmatpush.bf16.msra.mxu2 %v888_v21  ;;  %v931_v37 = vld [vmem:[#allocation5 + $0xc0] sm:$0xf]  ;;  %v944_v38 = vor.u32 %v1117_v31, %v941_v32  ;;  %v1116_v39 = vld [vmem:[#allocation5 + $0xc4] sm:$0xf0]  ;;  %v1099_v40 = vld [vmem:[#allocation5 + $0x44] sm:$0xf]  ;;  %v868_v44 = vor.u32 %v1100_v36, %v867_v35 }
  0x25   :  { %374 = vmatpush.bf16.msra.mxu3 %v952_v25  ;;  %v869_v41 = vld [vmem:[#allocation5 + $0x48] sm:$0xf0]  ;;  %v1115_v42 = vld [vmem:[#allocation5 + $0xc4] sm:$0xf]  ;;  %v932_v45 = vor.u32 %v1116_v39, %v931_v37  ;;  %v859_v47 = vld [vmem:[#allocation5 + $0x30] sm:$0xf] }
  0x26   :  { %v933_v43 = vld [vmem:[#allocation5 + $0xc8] sm:$0xf0]  ;;  %333 = vmatpush.bf16.msra.mxu0 %v876_v29  ;;  %v872_v46 = vor.u32 %v1099_v40, %v869_v41  ;;  %v1098_v48 = vld [vmem:[#allocation5 + $0x34] sm:$0xf0]  ;;  %v923_v49 = vld [vmem:[#allocation5 + $0xb0] sm:$0xf] }
  0x27   :  { %347 = vmatpush.bf16.msra.mxu1 %v940_v33  ;;  %v936_v50 = vor.u32 %v1115_v42, %v933_v43  ;;  %v1114_v51 = vld [vmem:[#allocation5 + $0xb4] sm:$0xf0]  ;;  %v1097_v52 = vld [vmem:[#allocation5 + $0x34] sm:$0xf]  ;;  %v861_v53 = vld [vmem:[#allocation5 + $0x38] sm:$0xf0]  ;;  %v860_v56 = vor.u32 %v1098_v48, %v859_v47 }
  0x28   :  { %361 = vmatpush.bf16.msra.mxu2 %v880_v34  ;;  %v1113_v54 = vld [vmem:[#allocation5 + $0xb4] sm:$0xf]  ;;  %v925_v55 = vld [vmem:[#allocation5 + $0xb8] sm:$0xf0]  ;;  %v924_v57 = vor.u32 %v1114_v51, %v923_v49  ;;  %v864_v58 = vor.u32 %v1097_v52, %v861_v53  ;;  %v851_v59 = vld [vmem:[#allocation5 + $0x20] sm:$0xf] }
  0x29   :  { %375 = vmatpush.bf16.msra.mxu3 %v944_v38  ;;  %v1096_v60 = vld [vmem:[#allocation5 + $0x24] sm:$0xf0]  ;;  %v915_v61 = vld [vmem:[#allocation5 + $0xa0] sm:$0xf]  ;;  %v928_v62 = vor.u32 %v1113_v54, %v925_v55  ;;  %v1095_v0 = vld [vmem:[#allocation5 + $0x24] sm:$0xf] }
  0x2a   :  { %334 = vmatpush.bf16.msra.mxu0 %v868_v44  ;;  %v1112_v63 = vld [vmem:[#allocation5 + $0xa4] sm:$0xf0]  ;;  %v853_v1 = vld [vmem:[#allocation5 + $0x28] sm:$0xf0]  ;;  %v1111_v2 = vld [vmem:[#allocation5 + $0xa4] sm:$0xf]  ;;  %v852_v4 = vor.u32 %v1096_v60, %v851_v59 }
  0x2b   :  { %348 = vmatpush.bf16.msra.mxu1 %v932_v45  ;;  %v917_v3 = vld [vmem:[#allocation5 + $0xa8] sm:$0xf0]  ;;  %v916_v5 = vor.u32 %v1112_v63, %v915_v61  ;;  %v856_v6 = vor.u32 %v1095_v0, %v853_v1  ;;  %v843_v7 = vld [vmem:[#allocation5 + $0x10] sm:$0xf]  ;;  %v1094_v8 = vld [vmem:[#allocation5 + $0x14] sm:$0xf0] }
  0x2c   :  { %362 = vmatpush.bf16.msra.mxu2 %v872_v46  ;;  %v907_v9 = vld [vmem:[#allocation5 + $0x90] sm:$0xf]  ;;  %v920_v10 = vor.u32 %v1111_v2, %v917_v3  ;;  %v1110_v11 = vld [vmem:[#allocation5 + $0x94] sm:$0xf0]  ;;  %v1093_v12 = vld [vmem:[#allocation5 + $0x14] sm:$0xf]  ;;  %v844_v16 = vor.u32 %v1094_v8, %v843_v7 }
  0x2d   :  { %376 = vmatpush.bf16.msra.mxu3 %v936_v50  ;;  %v845_v13 = vld [vmem:[#allocation5 + $0x18] sm:$0xf0]  ;;  %v1109_v14 = vld [vmem:[#allocation5 + $0x94] sm:$0xf]  ;;  %v908_v17 = vor.u32 %v1110_v11, %v907_v9  ;;  %v835_v19 = vld [vmem:[#allocation5] sm:$0xf] }
  0x2e   :  { %335 = vmatpush.bf16.msra.mxu0 %v860_v56  ;;  %v909_v15 = vld [vmem:[#allocation5 + $0x98] sm:$0xf0]  ;;  %v848_v18 = vor.u32 %v1093_v12, %v845_v13  ;;  %v1092_v20 = vld [vmem:[#allocation5 + $0x4] sm:$0xf0]  ;;  %v899_v21 = vld [vmem:[#allocation5 + $0x80] sm:$0xf] }
  0x2f   :  { %349 = vmatpush.bf16.msra.mxu1 %v924_v57  ;;  %v912_v22 = vor.u32 %v1109_v14, %v909_v15  ;;  %v1108_v23 = vld [vmem:[#allocation5 + $0x84] sm:$0xf0]  ;;  %v1091_v24 = vld [vmem:[#allocation5 + $0x4] sm:$0xf]  ;;  %v837_v25 = vld [vmem:[#allocation5 + $0x8] sm:$0xf0]  ;;  %v836_v28 = vor.u32 %v1092_v20, %v835_v19 }
  0x30   :  { %363 = vmatpush.bf16.msra.mxu2 %v864_v58  ;;  %v1107_v26 = vld [vmem:[#allocation5 + $0x84] sm:$0xf]  ;;  %v901_v27 = vld [vmem:[#allocation5 + $0x88] sm:$0xf0]  ;;  %v827_v29 = vld [vmem:[#allocation2] sm:$0xf]  ;;  %v900_v31 = vor.u32 %v1108_v23, %v899_v21  ;;  %v840_v32 = vor.u32 %v1091_v24, %v837_v25 }
  0x31   :  { %377 = vmatpush.bf16.msra.mxu3 %v928_v62  ;;  %v1090_v30 = vld [vmem:[#allocation2 + $0x4] sm:$0xf0]  ;;  %v1089_v33 = vld [vmem:[#allocation2 + $0x4] sm:$0xf]  ;;  %v829_v34 = vld [vmem:[#allocation2 + $0x8] sm:$0xf0]  ;;  %v904_v35 = vor.u32 %v1107_v26, %v901_v27 }
  0x32   :  { %336 = vmatpush.bf16.msra.mxu0 %v852_v4  ;;  %v828_v36 = vor.u32 %v1090_v30, %v827_v29  ;;  %v832_v37 = vor.u32 %v1089_v33, %v829_v34  ;;  %v155_v38 = vld [vmem:[#allocation7] sm:$0x3]  ;;  %v1019_v1 = vld [vmem:[#allocation10 + $0x70] sm:$0xf]  ;;  %v1138_v2 = vld [vmem:[#allocation10 + $0x74] sm:$0xf0] }
  0x33   :  { %350 = vmatpush.bf16.msra.mxu1 %v916_v5  ;;  %v157_v39 = vperm.slane %v155_v38, 0  ;;  %v158_v42 = vperm.slane %v155_v38, 1  ;;  %v1083_v3 = vld [vmem:[#allocation10 + $0xf0] sm:$0xf]  ;;  %v1020_v4 = vor.u32 %v1138_v2, %v1019_v1  ;;  %v1154_v5 = vld [vmem:[#allocation10 + $0xf4] sm:$0xf0] }
  0x34   :  { %364 = vmatpush.bf16.msra.mxu2 %v856_v6  ;;  %v1137_v6 = vld [vmem:[#allocation10 + $0x74] sm:$0xf]  ;;  %v1021_v7 = vld [vmem:[#allocation10 + $0x78] sm:$0xf0]  ;;  %v1084_v8 = vor.u32 %v1154_v5, %v1083_v3  ;;  %v1011_v13 = vld [vmem:[#allocation10 + $0x60] sm:$0xf] }
  0x35   :  { %378 = vmatpush.bf16.msra.mxu3 %v920_v10  ;;  %v1024_v9 = vor.u32 %v1137_v6, %v1021_v7  ;;  %v1153_v10 = vld [vmem:[#allocation10 + $0xf4] sm:$0xf]  ;;  %v1085_v11 = vld [vmem:[#allocation10 + $0xf8] sm:$0xf0]  ;;  %v1136_v14 = vld [vmem:[#allocation10 + $0x64] sm:$0xf0] }
  0x36   :  { %337 = vmatpush.bf16.msra.mxu0 %v844_v16  ;;  %v1088_v12 = vor.u32 %v1153_v10, %v1085_v11  ;;  %v1075_v15 = vld [vmem:[#allocation10 + $0xe0] sm:$0xf]  ;;  %v1012_v16 = vor.u32 %v1136_v14, %v1011_v13  ;;  %v1013_v19 = vld [vmem:[#allocation10 + $0x68] sm:$0xf0]  ;;  %v1003_v25 = vld [vmem:[#allocation10 + $0x50] sm:$0xf] }
  0x37   :  { %351 = vmatpush.bf16.msra.mxu1 %v908_v17  ;;  %v1152_v17 = vld [vmem:[#allocation10 + $0xe4] sm:$0xf0]  ;;  %v1077_v23 = vld [vmem:[#allocation10 + $0xe8] sm:$0xf0]  ;;  %v1134_v26 = vld [vmem:[#allocation10 + $0x54] sm:$0xf0] }
  0x38   :  { %365 = vmatpush.bf16.msra.mxu2 %v848_v18  ;;  %v1135_v18 = vld [vmem:[#allocation10 + $0x64] sm:$0xf]  ;;  %v1076_v20 = vor.u32 %v1152_v17, %v1075_v15  ;;  %v1067_v27 = vld [vmem:[#allocation10 + $0xd0] sm:$0xf]  ;;  %v1150_v29 = vld [vmem:[#allocation10 + $0xd4] sm:$0xf0] }
  0x39   :  { %379 = vmatpush.bf16.msra.mxu3 %v912_v22  ;;  %v1016_v21 = vor.u32 %v1135_v18, %v1013_v19  ;;  %v1151_v22 = vld [vmem:[#allocation10 + $0xe4] sm:$0xf]  ;;  %v1133_v30 = vld [vmem:[#allocation10 + $0x54] sm:$0xf]  ;;  %v1132_v38 = vld [vmem:[#allocation10 + $0x44] sm:$0xf0] }
  0x3a   :  { %338 = vmatpush.bf16.msra.mxu0 %v836_v28  ;;  %v1080_v24 = vor.u32 %v1151_v22, %v1077_v23  ;;  %v1004_v28 = vor.u32 %v1134_v26, %v1003_v25  ;;  %v1149_v34 = vld [vmem:[#allocation10 + $0xd4] sm:$0xf]  ;;  %v1128_v5 = vld [vmem:[#allocation10 + $0x24] sm:$0xf0]  ;;  %v1043_v6 = vld [vmem:[#allocation10 + $0xa0] sm:$0xf] }
  0x3b   :  { %352 = vmatpush.bf16.msra.mxu1 %v900_v31  ;;  %v1005_v31 = vld [vmem:[#allocation10 + $0x58] sm:$0xf0]  ;;  %v1127_v10 = vld [vmem:[#allocation10 + $0x24] sm:$0xf]  ;;  %v981_v13 = vld [vmem:[#allocation10 + $0x28] sm:$0xf0] }
  0x3c   :  { %366 = vmatpush.bf16.msra.mxu2 %v840_v32  ;;  %v1068_v32 = vor.u32 %v1150_v29, %v1067_v27  ;;  %v1008_v33 = vor.u32 %v1133_v30, %v1005_v31  ;;  %v1143_v14 = vld [vmem:[#allocation10 + $0xa4] sm:$0xf]  ;;  %v1045_v15 = vld [vmem:[#allocation10 + $0xa8] sm:$0xf0]  ;;  %v984_v17 = vor.u32 %v1127_v10, %v981_v13  ;;  %v971_v19 = vld [vmem:[#allocation10 + $0x10] sm:$0xf] }
  0x3d   :  { %380 = vmatpush.bf16.msra.mxu3 %v904_v35  ;;  %339 = vmatmul.bf16.vlgmr.msra.gmra.mxu0 %v828_v36  ;;  %v1069_v35 = vld [vmem:[#allocation10 + $0xd8] sm:$0xf0]  ;;  %v1048_v18 = vor.u32 %v1143_v14, %v1045_v15  ;;  %v1142_v23 = vld [vmem:[#allocation10 + $0x94] sm:$0xf0]  ;;  %v1141_v29 = vld [vmem:[#allocation10 + $0x94] sm:$0xf] }
  0x3e   :  { %353 = vmatmul.bf16.vlgmr.msra.gmra.mxu1 %v832_v37  ;;  %667 = vmatpush.bf16.msrb.mxu0 %v1020_v4  ;;  %v979_v4 = vld [vmem:[#allocation10 + $0x20] sm:$0xf]  ;;  %v973_v25 = vld [vmem:[#allocation10 + $0x18] sm:$0xf0]  ;;  %s809_s1 = sshll.u32 %s1520_s9, 4  ;;  %s810_s1 = int_to_ptr.hbm [resolvable:$true] %s809_s1 }
  0x3f   :  { %367 = vmatmul.bf16.vlgmr.msra.gmra.mxu2 %v828_v36  ;;  %681 = vmatpush.bf16.msrb.mxu1 %v1084_v8  ;;  %v1072_v36 = vor.u32 %v1149_v34, %v1069_v35  ;;  %v980_v11 = vor.u32 %v1128_v5, %v979_v4  ;;  %v1037_v30 = vld [vmem:[#allocation10 + $0x98] sm:$0xf0]  ;;  %v1124_v34 = vld [vmem:[#allocation10 + $0x4] sm:$0xf0]  ;;  %v1027_v35 = vld [vmem:[#allocation10 + $0x80] sm:$0xf] }
  0x40   :  { %381 = vmatmul.bf16.vlgmr.msra.gmra.mxu3 %v832_v37  ;;  %695 = vmatpush.bf16.msrb.mxu2 %v1024_v9  ;;  %v995_v37 = vld [vmem:[#allocation10 + $0x40] sm:$0xf]  ;;  %v1144_v9 = vld [vmem:[#allocation10 + $0xa4] sm:$0xf0] }
  0x41   :  { %709 = vmatpush.bf16.msrb.mxu3 %v1088_v12  ;;  %v1044_v12 = vor.u32 %v1144_v9, %v1043_v6 }
  0x42   :  { %668 = vmatpush.bf16.msrb.mxu0 %v1012_v16 }
  0x43   :  { %682 = vmatpush.bf16.msrb.mxu1 %v1076_v20  ;;  %v1126_v20 = vld [vmem:[#allocation10 + $0x14] sm:$0xf0] }
  0x44   :  { %696 = vmatpush.bf16.msrb.mxu2 %v1016_v21  ;;  %v1035_v21 = vld [vmem:[#allocation10 + $0x90] sm:$0xf]  ;;  %v972_v22 = vor.u32 %v1126_v20, %v971_v19 }
  0x45   :  { %710 = vmatpush.bf16.msrb.mxu3 %v1080_v24  ;;  %v1125_v24 = vld [vmem:[#allocation10 + $0x14] sm:$0xf]  ;;  %v1036_v27 = vor.u32 %v1142_v23, %v1035_v21 }
  0x46   :  { %669 = vmatpush.bf16.msrb.mxu0 %v1004_v28  ;;  %v976_v28 = vor.u32 %v1125_v24, %v973_v25 }
  0x47   :  { %683 = vmatpush.bf16.msrb.mxu1 %v1068_v32  ;;  %v1040_v32 = vor.u32 %v1141_v29, %v1037_v30 }
  0x48   :  { %697 = vmatpush.bf16.msrb.mxu2 %v1008_v33  ;;  %v963_v33 = vld [vmem:[#allocation10] sm:$0xf] }
  0x49   :  { %711 = vmatpush.bf16.msrb.mxu3 %v1072_v36 }
  0xba   :  { %v340_v40 = vpop.f32.mrf.mxu0 }
  0xbb   :  { %v341_v41 = vadd.f32 %v340_v40, %v157_v39  ;;  %v354_v43 = vpop.f32.mrf.mxu1  ;;  %v996_v40 = vor.u32 %v1132_v38, %v995_v37  ;;  %v1140_v38 = vld [vmem:[#allocation10 + $0x84] sm:$0xf0] }
  0xbd   :  { %v1436_v44 = vadd.f32 %v354_v43, %v341_v41  ;;  %v1148_v41 = vld [vmem:[#allocation10 + $0xc4] sm:$0xf0]  ;;  %v997_v43 = vld [vmem:[#allocation10 + $0x48] sm:$0xf0]  ;;  %670 = vmatpush.bf16.msrb.mxu0 %v996_v40  ;;  %v964_v40 = vor.u32 %v1124_v34, %v963_v33 }
  0xbf   :  { %v395_v50 = vmul.f32 %v1436_v44, %v1436_v44 }
  0xc2   :  { %v368_v45 = vpop.f32.mrf.mxu2  ;;  %v342_v48 = vpop.f32.mrf.mxu0 }
  0xc3   :  { %v369_v46 = vadd.f32 %v368_v45, %v158_v42  ;;  %v382_v47 = vpop.f32.mrf.mxu3  ;;  %v343_v51 = vadd.f32 %v342_v48, %v157_v39  ;;  %v356_v55 = vpop.f32.mrf.mxu1  ;;  %v1059_v39 = vld [vmem:[#allocation10 + $0xc0] sm:$0xf]  ;;  %v1061_v48 = vld [vmem:[#allocation10 + $0xc8] sm:$0xf0] }
  0xc4   :  { %v1060_v45 = vor.u32 %v1148_v41, %v1059_v39  ;;  %v1028_v41 = vor.u32 %v1140_v38, %v1027_v35 }
  0xc5   :  { %v1438_v49 = vadd.f32 %v382_v47, %v369_v46  ;;  %v1446_v57 = vadd.f32 %v356_v55, %v343_v51  ;;  %v1147_v47 = vld [vmem:[#allocation10 + $0xc4] sm:$0xf]  ;;  %v987_v51 = vld [vmem:[#allocation10 + $0x30] sm:$0xf]  ;;  %v1146_v55 = vld [vmem:[#allocation10 + $0xb4] sm:$0xf0] }
  0xc6   :  { %684 = vmatpush.bf16.msrb.mxu1 %v1060_v45  ;;  %v1139_v45 = vld [vmem:[#allocation10 + $0x84] sm:$0xf] }
  0xc7   :  { %v387_v52 = vadd.f32 %v1438_v49, %v1436_v44  ;;  %v396_v53 = vmul.f32 %v1438_v49, %v1438_v49  ;;  %v397_v62 = vmul.f32 %v1446_v57, %v1446_v57 }
  0xc9   :  { %388 = vadd.xlane.f32.xlu0 %v387_v52  ;;  %v399_v54 = vadd.f32 %v396_v53, %v395_v50  ;;  %v1064_v50 = vor.u32 %v1147_v47, %v1061_v48  ;;  %v1130_v52 = vld [vmem:[#allocation10 + $0x34] sm:$0xf0]  ;;  %v1051_v53 = vld [vmem:[#allocation10 + $0xb0] sm:$0xf] }
  0xca   :  { %v370_v56 = vpop.f32.mrf.mxu2 }
  0xcb   :  { %v371_v58 = vadd.f32 %v370_v56, %v158_v42  ;;  %400 = vadd.xlane.f32.xlu1 %v399_v54  ;;  %v384_v59 = vpop.f32.mrf.mxu3  ;;  %v1131_v42 = vld [vmem:[#allocation10 + $0x44] sm:$0xf]  ;;  %712 = vmatpush.bf16.msrb.mxu3 %v1064_v50  ;;  %v988_v54 = vor.u32 %v1130_v52, %v987_v51  ;;  %v1129_v56 = vld [vmem:[#allocation10 + $0x34] sm:$0xf] }
  0xcc   :  { %v1000_v46 = vor.u32 %v1131_v42, %v997_v43  ;;  %v1123_v42 = vld [vmem:[#allocation10 + $0x4] sm:$0xf]  ;;  %v965_v43 = vld [vmem:[#allocation10 + $0x8] sm:$0xf0] }
  0xcd   :  { %v1448_v60 = vadd.f32 %v384_v59, %v371_v58  ;;  %v989_v58 = vld [vmem:[#allocation10 + $0x38] sm:$0xf0]  ;;  %671 = vmatpush.bf16.msrb.mxu0 %v988_v54  ;;  %v968_v50 = vor.u32 %v1123_v42, %v965_v43 }
  0xce   :  { %698 = vmatpush.bf16.msrb.mxu2 %v1000_v46  ;;  %v1029_v46 = vld [vmem:[#allocation10 + $0x88] sm:$0xf0] }
  0xcf   :  { %v390_v61 = vadd.f32 %v1448_v60, %v1446_v57  ;;  %v398_v63 = vmul.f32 %v1448_v60, %v1448_v60  ;;  %v1032_v51 = vor.u32 %v1139_v45, %v1029_v46 }
  0xd1   :  { %391 = vadd.xlane.f32.xlu0 %v390_v61  ;;  %v402_v0 = vadd.f32 %v398_v63, %v397_v62  ;;  %v1052_v61 = vor.u32 %v1146_v55, %v1051_v53  ;;  %v992_v62 = vor.u32 %v1129_v56, %v989_v58  ;;  %v1145_v63 = vld [vmem:[#allocation10 + $0xb4] sm:$0xf]  ;;  %672 = vmatpush.bf16.msrb.mxu0 %v980_v11  ;;  %v453_v11 = vld [vmem:[#allocation8] sm:$0x3] }
  0xd3   :  { %403 = vadd.xlane.f32.xlu1 %v402_v0  ;;  %v1053_v0 = vld [vmem:[#allocation10 + $0xb8] sm:$0xf0]  ;;  %685 = vmatpush.bf16.msrb.mxu1 %v1052_v61 }
  0xd4   :  { %v1056_v2 = vor.u32 %v1145_v63, %v1053_v0  ;;  %699 = vmatpush.bf16.msrb.mxu2 %v992_v62  ;;  %v435_v62 = vld [vmem:[%s1514_s3] sm:$0x3] }
  0xd5   :  { %673 = vmatpush.bf16.msrb.mxu0 %v972_v22  ;;  %v438_v4 = vperm.slane %v435_v62, 1 }
  0xd6   :  { %713 = vmatpush.bf16.msrb.mxu3 %v1056_v2 }
  0xd7   :  { %686 = vmatpush.bf16.msrb.mxu1 %v1044_v12 }
  0xd8   :  { %700 = vmatpush.bf16.msrb.mxu2 %v984_v17 }
  0xd9   :  { %674 = vmatpush.bf16.msrb.mxu0 %v964_v40 }
  0xda   :  { %714 = vmatpush.bf16.msrb.mxu3 %v1048_v18  ;;  %v456_v18 = vperm.slane %v453_v11, 1 }
  0xdb   :  { %687 = vmatpush.bf16.msrb.mxu1 %v1036_v27 }
  0xdc   :  { %701 = vmatpush.bf16.msrb.mxu2 %v976_v28 }
  0xde   :  { %715 = vmatpush.bf16.msrb.mxu3 %v1040_v32 }
  0xdf   :  { %688 = vmatpush.bf16.msrb.mxu1 %v1028_v41 }
  0xe0   :  { %702 = vmatpush.bf16.msrb.mxu2 %v968_v50 }
  0xe2   :  { %716 = vmatpush.bf16.msrb.mxu3 %v1032_v51 }
 0x13c   :  { %v389_v59 = vpop.xlane.xlu0 %388 }
 0x13d   :  { %v1456_v1 = vmul.f32 0.005, %v389_v59 }
 0x13e   :  { %v401_v3 = vpop.xlane.xlu1 %400 }
 0x13f   :  { %v405_v7 = vmul.f32 0.005, %v401_v3  ;;  %v407_v8 = vmul.f32 %v1456_v1, %v1456_v1  ;;  %v437_v3 = vperm.slane %v435_v62, 0  ;;  %v445_v12 = vsub.f32 %v1436_v44, %v1456_v1 }
 0x140   :  { %v446_v13 = vsub.f32 %v1438_v49, %v1456_v1 }
 0x141   :  { %v409_v16 = vsub.f32 %v405_v7, %v407_v8 }
 0x143   :  { %v411_v26 = vmax.f32 %v409_v16, 0.0  ;;  %v455_v16 = vperm.slane %v453_v11, 0 }
 0x144   :  { %v392_v31 = vpop.xlane.xlu0 %391 }
 0x145   :  { %v413_v36 = vadd.f32 1e-05, %v411_v26  ;;  %v1460_v37 = vmul.f32 0.005, %v392_v31 }
 0x146   :  { %v404_v39 = vpop.xlane.xlu1 %403 }
 0x147   :  { %1164 = vrsqrt.f32 %v413_v36  ;;  %v406_v47 = vmul.f32 0.005, %v404_v39  ;;  %v408_v48 = vmul.f32 %v1460_v37, %v1460_v37  ;;  %vm421_vm1 = vweird.f32 %v413_v36 }
 0x148   :  { %v447_v20 = vsub.f32 %v1446_v57, %v1460_v37  ;;  %v448_v21 = vsub.f32 %v1448_v60, %v1460_v37  ;;  %v501_v57 = vld [vmem:[%s1517_s6] sm:$0x3] }
 0x149   :  { %v410_v52 = vsub.f32 %v406_v47, %v408_v48  ;;  %v503_v60 = vperm.slane %v501_v57, 0  ;;  %v504_v35 = vperm.slane %v501_v57, 1 }
 0x14b   :  { %v412_v53 = vmax.f32 %v410_v52, 0.0 }
 0x14d   :  { %v1165_v54 = vpop.eup %1164  ;;  %v414_v56 = vadd.f32 1e-05, %v412_v53 }
 0x14e   :  { %v416_v55 = vmul.f32 %v1165_v54, %v413_v36  ;;  %vm422_vm0 = vweird.f32 %v1165_v54 }
 0x14f   :  { %1166 = vrsqrt.f32 %v414_v56  ;;  %vm423_vm2 = vmor %vm421_vm1, %vm422_vm0  ;;  %vm431_vm4 = vweird.f32 %v414_v56 }
 0x150   :  { %v417_v58 = vmul.f32 %v1165_v54, %v416_v55 }
 0x152   :  { %v418_v59 = vmul.f32 0.5, %v417_v58 }
 0x154   :  { %v419_v61 = vsub.f32 1.5, %v418_v59 }
 0x155   :  { %v1167_v63 = vpop.eup %1166 }
 0x156   :  { %v420_v0 = vmul.f32 %v1165_v54, %v419_v61  ;;  %v426_v2 = vmul.f32 %v1167_v63, %v414_v56  ;;  %vm432_vm3 = vweird.f32 %v1167_v63 }
 0x157   :  { %vm433_vm5 = vmor %vm431_vm4, %vm432_vm3 }
 0x158   :  { %v424_v5 = vsel %vm423_vm2, %v1165_v54, %v420_v0  ;;  %v427_v6 = vmul.f32 %v1167_v63, %v426_v2 }
 0x159   :  { %v441_v8 = vmul.f32 %v437_v3, %v424_v5  ;;  %v442_v9 = vmul.f32 %v438_v4, %v424_v5 }
 0x15a   :  { %v428_v7 = vmul.f32 0.5, %v427_v6 }
 0x15b   :  { %v449_v15 = vmul.f32 %v445_v12, %v441_v8  ;;  %v450_v17 = vmul.f32 %v446_v13, %v442_v9 }
 0x15c   :  { %v429_v10 = vsub.f32 1.5, %v428_v7 }
 0x15d   :  { %v459_v24 = vadd.f32 %v455_v16, %v449_v15  ;;  %v460_v49 = vadd.f32 %v456_v18, %v450_v17 }
 0x15e   :  { %v430_v14 = vmul.f32 %v1167_v63, %v429_v10 }
 0x15f   :  { %v463_v27 = vmax.f32 %v459_v24, 0.0  ;;  %v464_v29 = vmax.f32 %v460_v49, 0.0 }
 0x160   :  { %v434_v19 = vsel %vm433_vm5, %v1167_v63, %v430_v14 }
 0x161   :  { %v443_v22 = vmul.f32 %v437_v3, %v434_v19  ;;  %v444_v23 = vmul.f32 %v438_v4, %v434_v19 }
 0x163   :  { %v451_v44 = vmul.f32 %v447_v20, %v443_v22  ;;  %v452_v25 = vmul.f32 %v448_v21, %v444_v23  ;;  %v789_v23 = vld [vmem:[#allocation11] sm:$0x3] }
 0x165   :  { %v461_v1 = vadd.f32 %v455_v16, %v451_v44  ;;  %v462_v26 = vadd.f32 %v456_v18, %v452_v25  ;;  %v771_v18 = vld [vmem:[%s1518_s7] sm:$0x3]  ;;  %s1358_s7 = smov [#allocation13]  }
 0x166   :  { %v773_v21 = vperm.slane %v771_v18, 0  ;;  %v774_v22 = vperm.slane %v771_v18, 1  ;;  %s807_s20 = sshll.u32 %s1358_s7, 4  ;;  %s808_s20 = int_to_ptr.vmem [resolvable:$true] %s807_s20 }
 0x167   :  { %v465_v28 = vmax.f32 %v461_v1, 0.0  ;;  %v466_v30 = vmax.f32 %v462_v26, 0.0  ;;  %v791_v26 = vperm.slane %v789_v23, 0 }
 0x169   :  { %v467_v31 = vpack.c.bf16 %v465_v28, %v463_v27  ;;  %v468_v32 = vpack.c.bf16 %v466_v30, %v464_v29  ;;  %v792_v27 = vperm.slane %v789_v23, 1 }
 0x16b   :  { %675 = vmatmul.bf16.vlgmr.msrb.gmra.mxu0 %v467_v31  ;;  %689 = vmatmul.bf16.vlgmr.msrb.gmra.mxu1 %v468_v32 }
 0x16c   :  { %703 = vmatmul.bf16.vlgmr.msrb.gmra.mxu2 %v467_v31  ;;  %717 = vmatmul.bf16.vlgmr.msrb.gmra.mxu3 %v468_v32 }
 0x1e8   :  { %v676_v33 = vpop.f32.mrf.mxu0  ;;  %v690_v36 = vpop.f32.mrf.mxu1 }
 0x1e9   :  { %v677_v34 = vadd.f32 %v676_v33, %v503_v60 }
 0x1eb   :  { %v1478_v39 = vadd.f32 %v690_v36, %v677_v34 }
 0x1ed   :  { %v731_v46 = vmul.f32 %v1478_v39, %v1478_v39 }
 0x1ef   :  { %v704_v37 = vpop.f32.mrf.mxu2  ;;  %v718_v38 = vpop.f32.mrf.mxu3 }
 0x1f0   :  { %v705_v40 = vadd.f32 %v704_v37, %v504_v35  ;;  %v678_v41 = vpop.f32.mrf.mxu0  ;;  %v692_v50 = vpop.f32.mrf.mxu1 }
 0x1f1   :  { %v679_v43 = vadd.f32 %v678_v41, %v503_v60 }
 0x1f2   :  { %v1480_v42 = vadd.f32 %v718_v38, %v705_v40 }
 0x1f3   :  { %v1488_v52 = vadd.f32 %v692_v50, %v679_v43 }
 0x1f4   :  { %v723_v45 = vadd.f32 %v1480_v42, %v1478_v39  ;;  %v732_v47 = vmul.f32 %v1480_v42, %v1480_v42 }
 0x1f5   :  { %v733_v58 = vmul.f32 %v1488_v52, %v1488_v52 }
 0x1f6   :  { %724 = vadd.xlane.f32.xlu2 %v723_v45  ;;  %v735_v48 = vadd.f32 %v732_v47, %v731_v46 }
 0x1f7   :  { %v706_v51 = vpop.f32.mrf.mxu2  ;;  %v720_v54 = vpop.f32.mrf.mxu3 }
 0x1f8   :  { %v707_v53 = vadd.f32 %v706_v51, %v504_v35  ;;  %736 = vadd.xlane.f32.xlu0 %v735_v48 }
 0x1fa   :  { %v1490_v55 = vadd.f32 %v720_v54, %v707_v53 }
 0x1fc   :  { %v726_v56 = vadd.f32 %v1490_v55, %v1488_v52  ;;  %v734_v59 = vmul.f32 %v1490_v55, %v1490_v55 }
 0x1fe   :  { %727 = vadd.xlane.f32.xlu2 %v726_v56  ;;  %v738_v61 = vadd.f32 %v734_v59, %v733_v58 }
 0x200   :  { %739 = vadd.xlane.f32.xlu1 %v738_v61 }
 0x269   :  { %v725_v62 = vpop.xlane.xlu2 %724 }
 0x26a   :  { %v729_v63 = vmul.f32 0.005, %v725_v62 }
 0x26b   :  { %v737_v0 = vpop.xlane.xlu0 %736 }
 0x26c   :  { %v741_v2 = vmul.f32 0.005, %v737_v0  ;;  %v743_v3 = vmul.f32 %v729_v63, %v729_v63  ;;  %v781_v49 = vsub.f32 %v1478_v39, %v729_v63  ;;  %v782_v28 = vsub.f32 %v1480_v42, %v729_v63 }
 0x26e   :  { %v745_v4 = vsub.f32 %v741_v2, %v743_v3 }
 0x270   :  { %v747_v5 = vmax.f32 %v745_v4, 0.0 }
 0x271   :  { %v728_v6 = vpop.xlane.xlu2 %727 }
 0x272   :  { %v749_v7 = vadd.f32 1e-05, %v747_v5  ;;  %v730_v8 = vmul.f32 0.005, %v728_v6 }
 0x273   :  { %v740_v9 = vpop.xlane.xlu1 %739 }
 0x274   :  { %1168 = vrsqrt.f32 %v749_v7  ;;  %v742_v10 = vmul.f32 0.005, %v740_v9  ;;  %v744_v11 = vmul.f32 %v730_v8, %v730_v8  ;;  %vm757_vm7 = vweird.f32 %v749_v7 }
 0x275   :  { %v783_v39 = vsub.f32 %v1488_v52, %v730_v8  ;;  %v784_v40 = vsub.f32 %v1490_v55, %v730_v8 }
 0x276   :  { %v746_v12 = vsub.f32 %v742_v10, %v744_v11 }
 0x278   :  { %v748_v13 = vmax.f32 %v746_v12, 0.0 }
 0x27a   :  { %v1169_v14 = vpop.eup %1168  ;;  %v750_v16 = vadd.f32 1e-05, %v748_v13 }
 0x27b   :  { %v752_v15 = vmul.f32 %v1169_v14, %v749_v7  ;;  %vm758_vm6 = vweird.f32 %v1169_v14 }
 0x27c   :  { %1170 = vrsqrt.f32 %v750_v16  ;;  %vm759_vm8 = vmor %vm757_vm7, %vm758_vm6  ;;  %vm767_vm10 = vweird.f32 %v750_v16 }
 0x27d   :  { %v753_v17 = vmul.f32 %v1169_v14, %v752_v15 }
 0x27f   :  { %v754_v19 = vmul.f32 0.5, %v753_v17 }
 0x281   :  { %v755_v20 = vsub.f32 1.5, %v754_v19 }
 0x282   :  { %v1171_v44 = vpop.eup %1170 }
 0x283   :  { %v756_v24 = vmul.f32 %v1169_v14, %v755_v20  ;;  %v762_v25 = vmul.f32 %v1171_v44, %v750_v16  ;;  %vm768_vm9 = vweird.f32 %v1171_v44 }
 0x284   :  { %vm769_vm11 = vmor %vm767_vm10, %vm768_vm9 }
 0x285   :  { %v760_v1 = vsel %vm759_vm8, %v1169_v14, %v756_v24  ;;  %v763_v31 = vmul.f32 %v1171_v44, %v762_v25 }
 0x286   :  { %v777_v29 = vmul.f32 %v773_v21, %v760_v1  ;;  %v778_v30 = vmul.f32 %v774_v22, %v760_v1 }
 0x287   :  { %v764_v32 = vmul.f32 0.5, %v763_v31 }
 0x288   :  { %v785_v57 = vmul.f32 %v781_v49, %v777_v29  ;;  %v786_v60 = vmul.f32 %v782_v28, %v778_v30 }
 0x289   :  { %v765_v33 = vsub.f32 1.5, %v764_v32 }
 0x28a   :  { %v795_v34 = vadd.f32 %v791_v26, %v785_v57  ;;  %v796_v35 = vadd.f32 %v792_v27, %v786_v60 }
 0x28b   :  { %v766_v36 = vmul.f32 %v1171_v44, %v765_v33 }
 0x28c   :  { %v799_v37 = vpack.c.bf16 %v796_v35, %v795_v34 }
 0x28d   :  { %v770_v38 = vsel %vm769_vm11, %v1171_v44, %v766_v36 }
 0x28e   :  { %801 = vst [vmem:[#allocation13] sm:$0xff] %v799_v37  ;;  %v779_v41 = vmul.f32 %v773_v21, %v770_v38  ;;  %v780_v42 = vmul.f32 %v774_v22, %v770_v38 }
 0x290   :  { %v787_v43 = vmul.f32 %v783_v39, %v779_v41  ;;  %v788_v45 = vmul.f32 %v784_v40, %v780_v42 }
 0x292   :  { %v797_v46 = vadd.f32 %v791_v26, %v787_v43  ;;  %v798_v47 = vadd.f32 %v792_v27, %v788_v45 }
 0x294   :  { %v800_v48 = vpack.c.bf16 %v798_v47, %v797_v46 }
 0x296   :  { %802 = vst [vmem:[#allocation13 + $0x8] sm:$0xff] %v800_v48 }
 0x297   :  { %815 = dma.vmem_to_hbm [thread:$0]  %s808_s20, 256, %s810_s1, [#allocation4], %s1351_s17, %s1351_s17, %s1352_s18  }
 0x298   :  { %1348 = dma.done.wait [#allocation4], 256  }
 0x299   :  { %1349 = vsyncadd [#allocation4], 4294967040 }
 0x29a   :  { %820 = vsyncpa [#allocation3], 1 }
 0x29b   :  { %821 = vsyncpa [#allocation6], 1 }
 0x29c   :  { %822 = vsyncpa [#allocation9], 1 }
 0x29d   :  { %823 = vsyncpa [#allocation12], 1 }
 0x29e   :  { %824 = vsyncpa [#allocation4], 1 }

</bundles_post_ra>
